<compile_context>
chip_gen: v7x
topology: tpu7x:2x2x1
jax: 0.10.0
libtpu: 0.0.40
codegen_flags: <defaults>
</compile_context>

<pallas_src>
import functools

import jax
import jax.numpy as jnp
from jax import lax
from jax.experimental import pallas as pl
from jax.experimental.pallas import tpu as pltpu


# ---------------------------------------------------------------------------
# Tiled linear: y = x @ Wt + b   (bf16 operands, f32 accumulation)
# ---------------------------------------------------------------------------
def linear_kernel(x_ref, wt_ref, b_ref, o_ref, acc_ref):
    @pl.when(pl.program_id(2) == 0)
    def _():
        acc_ref[...] = jnp.zeros_like(acc_ref)

    acc_ref[...] += jnp.dot(x_ref[...], wt_ref[...],
                            preferred_element_type=jnp.float32)

    @pl.when(pl.program_id(2) == pl.num_programs(2) - 1)
    def _():
        # Bias added exactly once, in the finalize branch.
        o_ref[...] = (acc_ref[...] + b_ref[...]).astype(o_ref.dtype)


def pallas_linear(x, wt, b, out_dtype, *, tm=1024, tn=512, tk=512):
    """x: [M, K], wt: [K, N] bf16 (pre-transposed nn.Linear weight), b: [N] f32."""
    M, K = x.shape
    K2, N = wt.shape
    assert K == K2
    x = x.astype(jnp.bfloat16)                       # bf16 MXU operands, f32 acc
    b2 = b.reshape(1, N).astype(jnp.float32)

    # Token count (M) can be ragged: pad up to the tile so every block stays
    # (8,128)-aligned instead of falling back to one giant block.
    if M <= tm:
        tm_eff, m_pad = M, M
    else:
        tm_eff = tm
        m_pad = M + ((-M) % tm)
        if m_pad != M:
            x = jnp.pad(x, ((0, m_pad - M), (0, 0)))

    # K / N are embed-dim derived (multiples of 128 for real OPT configs);
    # fall back to the full dim only when small / non-divisible.
    tn_eff = tn if (N > tn and N % tn == 0) else N
    tk_eff = tk if (K > tk and K % tk == 0) else K

    grid = (m_pad // tm_eff, N // tn_eff, K // tk_eff)

    out = pl.pallas_call(
        linear_kernel,
        out_shape=jax.ShapeDtypeStruct((m_pad, N), out_dtype),
        grid_spec=pltpu.PrefetchScalarGridSpec(
            num_scalar_prefetch=0,
            grid=grid,
            in_specs=[
                pl.BlockSpec((tm_eff, tk_eff), lambda i, j, k: (i, k)),
                pl.BlockSpec((tk_eff, tn_eff), lambda i, j, k: (k, j)),
                pl.BlockSpec((1, tn_eff), lambda i, j, k: (0, j)),
            ],
            out_specs=pl.BlockSpec((tm_eff, tn_eff), lambda i, j, k: (i, j)),
            scratch_shapes=[pltpu.VMEM((tm_eff, tn_eff), jnp.float32)],
        ),
        compiler_params=pltpu.CompilerParams(
            dimension_semantics=("parallel", "parallel", "arbitrary")),
    )(x, wt, b2)
    return out[:M] if m_pad != M else out


# ---------------------------------------------------------------------------
# Flash-style causal attention, token-major blocks (all heads per grid step)
# ---------------------------------------------------------------------------
def flash_attn_kernel(q_ref, k_ref, v_ref, o_ref, m_ref, l_ref, acc_ref,
                      *, num_heads):
    qi = pl.program_id(0)
    kv = pl.program_id(1)
    tq, E = q_ref.shape
    tkv = k_ref.shape[0]
    H = num_heads
    D = E // H

    @pl.when(kv == 0)
    def _():
        m_ref[...] = jnp.full_like(m_ref, -jnp.inf)
        l_ref[...] = jnp.zeros_like(l_ref)
        acc_ref[...] = jnp.zeros_like(acc_ref)

    q_row0 = qi * tq                              # first query row of this block
    kv_col0 = kv * tkv                            # first key column of this block
    needed = kv_col0 <= q_row0 + tq - 1           # block has >= 1 unmasked column
    crosses = kv_col0 + tkv - 1 > q_row0          # block crosses the causal diagonal

    def process(masked):
        if masked:
            row = q_row0 + lax.broadcasted_iota(jnp.int32, (tq, tkv), 0)
            col = kv_col0 + lax.broadcasted_iota(jnp.int32, (tq, tkv), 1)
            keep = col <= row                     # shared across heads
        # Per-head 2-D flash update (static unroll over heads). All operands
        # are static lane slices of the token-major blocks, so nothing needs a
        # 3-D transpose/relayout in-kernel.
        for h in range(H):
            sl = slice(h * D, (h + 1) * D)
            q_h = q_ref[:, sl]                    # (tq,  D) bf16
            k_h = k_ref[:, sl]                    # (tkv, D) bf16
            v_h = v_ref[:, sl]                    # (tkv, D) bf16
            s = jnp.dot(q_h, k_h.T, preferred_element_type=jnp.float32)
            if masked:
                s = jnp.where(keep, s, jnp.float32(-1e30))
            m_prev = m_ref[:, h:h + 1]            # (tq, 1)
            m_new = jnp.maximum(m_prev, s.max(axis=-1, keepdims=True))
            alpha = jnp.exp(m_prev - m_new)
            p = jnp.exp(s - m_new)                # (tq, tkv) f32 softmax math
            l_ref[:, h:h + 1] = (alpha * l_ref[:, h:h + 1]
                                 + p.sum(axis=-1, keepdims=True))
            acc_ref[:, sl] = alpha * acc_ref[:, sl] + jnp.dot(
                p.astype(v_h.dtype), v_h, preferred_element_type=jnp.float32)
            m_ref[:, h:h + 1] = m_new

    @pl.when(jnp.logical_and(needed, crosses))
    def _():
        process(masked=True)          # diagonal block: build + apply causal mask

    @pl.when(jnp.logical_and(needed, jnp.logical_not(crosses)))
    def _():
        process(masked=False)         # fully-below-diagonal fast path: no mask

    @pl.when(kv == pl.num_programs(1) - 1)
    def _():
        inv = pl.reciprocal(l_ref[...], approx=True)          # (tq, H)
        out = jnp.concatenate(
            [acc_ref[:, h * D:(h + 1) * D] * inv[:, h:h + 1] for h in range(H)],
            axis=-1)                                           # (tq, E) lane-dense
        o_ref[...] = out.astype(o_ref.dtype)


def pallas_causal_attention(q, k, v, *, num_heads, tq=128, tkv=128):
    """q, k, v: [S, E] token-major (scale pre-folded into q) -> [S, E].

    Note: on v6e/v7x tkv=256 better fills the 256-wide MXU; 128 is the safe
    default across v5e/v6e/v7x.
    """
    S, E = q.shape
    H = num_heads
    assert E % H == 0
    assert max(tq, tkv) % min(tq, tkv) == 0
    q = q.astype(jnp.bfloat16)
    k = k.astype(jnp.bfloat16)
    v = v.astype(jnp.bfloat16)

    if S <= max(tq, tkv):
        tq = tkv = S                   # one block == full dims (always legal)
        s_pad = S
    else:
        blk = max(tq, tkv)
        s_pad = S + ((-S) % blk)       # pad tokens instead of one giant block
        if s_pad != S:
            pad = ((0, s_pad - S), (0, 0))
            q, k, v = jnp.pad(q, pad), jnp.pad(k, pad), jnp.pad(v, pad)

    grid = (s_pad // tq, s_pad // tkv)

    q_spec = pl.BlockSpec((tq, E), lambda i, j: (i, 0))
    # Clamp causally-skipped kv steps onto the last needed block: the block
    # index is unchanged vs. the previous step, so no new K/V DMA is issued.
    kv_spec = pl.BlockSpec(
        (tkv, E), lambda i, j: (jnp.minimum(j, ((i + 1) * tq - 1) // tkv), 0))
    out_spec = pl.BlockSpec((tq, E), lambda i, j: (i, 0))

    out = pl.pallas_call(
        functools.partial(flash_attn_kernel, num_heads=H),
        out_shape=jax.ShapeDtypeStruct((s_pad, E), q.dtype),
        grid_spec=pltpu.PrefetchScalarGridSpec(
            num_scalar_prefetch=0,
            grid=grid,
            in_specs=[q_spec, kv_spec, kv_spec],
            out_specs=out_spec,
            scratch_shapes=[
                pltpu.VMEM((tq, H), jnp.float32),   # running max (2-D, no lane-1 pad)
                pltpu.VMEM((tq, H), jnp.float32),   # running sum
                pltpu.VMEM((tq, E), jnp.float32),   # lane-dense output accumulator
            ],
        ),
        compiler_params=pltpu.CompilerParams(
            dimension_semantics=("parallel", "arbitrary")),
    )(q, k, v)
    return out[:S] if s_pad != S else out


# ---------------------------------------------------------------------------
# Module
# ---------------------------------------------------------------------------
class OPTAttentionPallas:
    """JAX/Pallas re-implementation of cacheflow OPTAttention (prompt phase)."""

    def __init__(self, embed_dim, num_heads, key, bias=True, param_std=0.1):
        self.embed_dim = embed_dim
        self.num_heads = num_heads
        self.head_dim = embed_dim // num_heads
        self.scaling = float(self.head_dim) ** -0.5

        ks = jax.random.split(key, 8)

        def mk_linear(kw, kb):
            w = param_std * jax.random.normal(kw, (embed_dim, embed_dim), jnp.float32)
            b = param_std * jax.random.normal(kb, (embed_dim,), jnp.float32)
            return w, b

        q_w, q_b = mk_linear(ks[0], ks[1])
        k_w, k_b = mk_linear(ks[2], ks[3])
        v_w, v_b = mk_linear(ks[4], ks[5])
        o_w, o_b = mk_linear(ks[6], ks[7])

        # Fold the 1/sqrt(head_dim) attention scale into the q projection once.
        q_w = q_w * self.scaling
        q_b = q_b * self.scaling

        # Fused QKV weight [3E, E], stored pre-transposed ([E, 3E]) in bf16 once.
        self.qkv_wt = jnp.concatenate([q_w, k_w, v_w], axis=0).T.astype(jnp.bfloat16)
        self.qkv_b = jnp.concatenate([q_b, k_b, v_b], axis=0)            # [3E] f32
        self.o_wt = o_w.T.astype(jnp.bfloat16)                            # [E, E]
        self.o_b = o_b                                                     # [E]  f32

    def __call__(self, hidden_states, kv_cache=None):
        # Fused Q/K/V projection: one tiled matmul instead of three.
        qkv = pallas_linear(hidden_states, self.qkv_wt, self.qkv_b,
                            out_dtype=jnp.bfloat16)                        # [S, 3E]
        q, k, v = jnp.split(qkv, 3, axis=-1)

        # TODO(synk): paged KV-cache writeback and the single-query decode path
        # of OPTCacheFlowAttention (slot_mapping / block_tables / cache_event)
        # are not modeled; this is the prompt-phase causal attention only.
        attn = pallas_causal_attention(q, k, v, num_heads=self.num_heads)  # [S, E]

        out = pallas_linear(attn, self.o_wt, self.o_b,
                            out_dtype=hidden_states.dtype)                 # [S, E]
        return out


# ---------------------------------------------------------------------------
# Reference (pure JAX, precision-matched: bf16 MXU operands, f32 accumulation)
# ---------------------------------------------------------------------------
def reference_forward(mod, hidden_states):
    S, E = hidden_states.shape
    H, D = mod.num_heads, mod.head_dim

    x = hidden_states.astype(jnp.bfloat16)
    qkv = (jnp.dot(x, mod.qkv_wt, preferred_element_type=jnp.float32)
           + mod.qkv_b).astype(jnp.bfloat16)
    q, k, v = jnp.split(qkv, 3, axis=-1)        # scale already folded into weights

    qh = jnp.transpose(q.reshape(S, H, D), (1, 0, 2))
    kh = jnp.transpose(k.reshape(S, H, D), (1, 0, 2))
    vh = jnp.transpose(v.reshape(S, H, D), (1, 0, 2))

    s = jnp.einsum("hqd,hkd->hqk", qh, kh, preferred_element_type=jnp.float32)
    mask = jnp.tril(jnp.ones((S, S), bool))
    s = jnp.where(mask[None], s, jnp.float32(-1e30))
    m = s.max(axis=-1, keepdims=True)
    p = jnp.exp(s - m)
    denom = p.sum(axis=-1, keepdims=True)
    o = jnp.einsum("hqk,hkd->hqd", p.astype(jnp.bfloat16), vh,
                   preferred_element_type=jnp.float32)
    o = (o / denom).astype(jnp.bfloat16)

    o = jnp.transpose(o, (1, 0, 2)).reshape(S, E)
    out = jnp.dot(o, mod.o_wt, preferred_element_type=jnp.float32) + mod.o_b
    return out.astype(hidden_states.dtype)


if __name__ == "__main__":
    key = jax.random.PRNGKey(0)
    k_param, k_x = jax.random.split(key)

    seq_len = 8
    embed_dim = 32
    num_heads = 4

    module = OPTAttentionPallas(embed_dim, num_heads, k_param)
    hidden_states = jax.random.normal(k_x, (seq_len, embed_dim), jnp.float32)

    out = module(hidden_states)
    out = jax.block_until_ready(out)

    ref = reference_forward(module, hidden_states)
    assert out.shape == (seq_len, embed_dim)
    assert jnp.allclose(out, ref, atol=2e-2, rtol=2e-2), "mismatch vs reference"

    print("KERNEL_OK")
</pallas_src>

<mosaic_0001>
module attributes {stable_mosaic.version = 11 : i64} {
  func.func @linear_kernel(%arg0: i32, %arg1: i32, %arg2: i32, %arg3: memref<8x32xbf16, #tpu.memory_space<vmem>>, %arg4: memref<32x96xbf16, #tpu.memory_space<vmem>>, %arg5: memref<1x96xf32, #tpu.memory_space<vmem>>, %arg6: memref<8x96xbf16, #tpu.memory_space<vmem>>, %arg7: memref<8x96xf32, #tpu.memory_space<vmem>>) attributes {dimension_semantics = [#tpu.dimension_semantics<parallel>, #tpu.dimension_semantics<parallel>, #tpu.dimension_semantics<arbitrary>], iteration_bounds = array<i64: 1, 1, 1>, scalar_prefetch = 0 : i64, scratch_operands = 1 : i64, tpu.core_type = #tpu.core_type<tc>, window_params = [{transform_indices = @transform_0, window_bounds = array<i64: 8, 32>}, {transform_indices = @transform_1, window_bounds = array<i64: 32, 96>}, {transform_indices = @transform_2, window_bounds = array<i64: 1, 96>}, {transform_indices = @transform_3, window_bounds = array<i64: 8, 96>}]} {
    %c0_i32 = arith.constant 0 : i32
    %0 = arith.cmpi eq, %arg2, %c0_i32 : i32
    %1 = arith.extui %0 : i1 to i32
    %c0_i32_0 = arith.constant 0 : i32
    %2 = arith.cmpi ne, %1, %c0_i32_0 : i32
    scf.if %2 {
      %cst_10 = arith.constant 0.000000e+00 : f32
      %12 = vector.broadcast %cst_10 : f32 to vector<8x96xf32>
      %c0_11 = arith.constant 0 : index
      %c0_12 = arith.constant 0 : index
      %13 = vector.load %arg7[%c0_11, %c0_12] : memref<8x96xf32, #tpu.memory_space<vmem>>, vector<8x96xf32>
      tpu.vector_store %arg7[%c0_11, %c0_12], %12 {strides = array<i32>} : memref<8x96xf32, #tpu.memory_space<vmem>>, vector<8x96xf32>,
    } else {
    }
    %c0 = arith.constant 0 : index
    %c0_1 = arith.constant 0 : index
    %3 = vector.load %arg7[%c0, %c0_1] : memref<8x96xf32, #tpu.memory_space<vmem>>, vector<8x96xf32>
    %c0_2 = arith.constant 0 : index
    %c0_3 = arith.constant 0 : index
    %4 = vector.load %arg3[%c0_2, %c0_3] : memref<8x32xbf16, #tpu.memory_space<vmem>>, vector<8x32xbf16>
    %c0_4 = arith.constant 0 : index
    %c0_5 = arith.constant 0 : index
    %5 = vector.load %arg4[%c0_4, %c0_5] : memref<32x96xbf16, #tpu.memory_space<vmem>>, vector<32x96xbf16>
    %cst = arith.constant dense<0.000000e+00> : vector<8x96xf32>
    %6 = tpu.matmul %4, %5, %cst {dimension_numbers = #tpu.dot_dimension_numbers<[1], [0], [0], [1], [0, 0, 1, 1], [], []>} : vector<8x32xbf16>, vector<32x96xbf16>, vector<8x96xf32> -> vector<8x96xf32>
    %7 = arith.addf %3, %6 : vector<8x96xf32>
    %c0_6 = arith.constant 0 : index
    %c0_7 = arith.constant 0 : index
    %8 = vector.load %arg7[%c0_6, %c0_7] : memref<8x96xf32, #tpu.memory_space<vmem>>, vector<8x96xf32>
    tpu.vector_store %arg7[%c0_6, %c0_7], %7 {strides = array<i32>} : memref<8x96xf32, #tpu.memory_space<vmem>>, vector<8x96xf32>,
    %c0_i32_8 = arith.constant 0 : i32
    %9 = arith.cmpi eq, %arg2, %c0_i32_8 : i32
    %10 = arith.extui %9 : i1 to i32
    %c0_i32_9 = arith.constant 0 : i32
    %11 = arith.cmpi ne, %10, %c0_i32_9 : i32
    scf.if %11 {
      %c0_10 = arith.constant 0 : index
      %c0_11 = arith.constant 0 : index
      %12 = vector.load %arg7[%c0_10, %c0_11] : memref<8x96xf32, #tpu.memory_space<vmem>>, vector<8x96xf32>
      %c0_12 = arith.constant 0 : index
      %c0_13 = arith.constant 0 : index
      %13 = vector.load %arg5[%c0_12, %c0_13] : memref<1x96xf32, #tpu.memory_space<vmem>>, vector<1x96xf32>
      %14 = vector.broadcast %13 : vector<1x96xf32> to vector<8x96xf32>
      %15 = arith.addf %12, %14 : vector<8x96xf32>
      %16 = arith.truncf %15 : vector<8x96xf32> to vector<8x96xbf16>
      %c0_14 = arith.constant 0 : index
      %c0_15 = arith.constant 0 : index
      %17 = vector.load %arg6[%c0_14, %c0_15] : memref<8x96xbf16, #tpu.memory_space<vmem>>, vector<8x96xbf16>
      tpu.vector_store %arg6[%c0_14, %c0_15], %16 {strides = array<i32>} : memref<8x96xbf16, #tpu.memory_space<vmem>>, vector<8x96xbf16>,
    } else {
    }
    return
  }
  func.func @transform_0(%arg0: i32, %arg1: i32, %arg2: i32) -> (i32, i32) {
    %c0_i32 = arith.constant 0 : i32
    return %arg0, %arg2 : i32, i32
  }
  func.func @transform_1(%arg0: i32, %arg1: i32, %arg2: i32) -> (i32, i32) {
    %c0_i32 = arith.constant 0 : i32
    return %arg2, %arg1 : i32, i32
  }
  func.func @transform_2(%arg0: i32, %arg1: i32, %arg2: i32) -> (i32, i32) {
    %c0_i32 = arith.constant 0 : i32
    %c0_i32_0 = arith.constant 0 : i32
    return %c0_i32, %arg1 : i32, i32
  }
  func.func @transform_3(%arg0: i32, %arg1: i32, %arg2: i32) -> (i32, i32) {
    %c0_i32 = arith.constant 0 : i32
    return %arg0, %arg1 : i32, i32
  }
}

</mosaic_0001>

<bundles_post_ra>
// kernel: tpu_custom_call.1
= control target key start
LH: loop header
LB: loop body
LE: loop exit
PB: predicated region body
PF: predicated region fallthrough
CT: control target
= control target key end

     0   :  { %8 = vsyncpa [#allocation4], 0  ;;  %s315_s0 = inlined_call_operand.hbm [shape: bf16[8,32], index: 0, kind: input, shape index: {}]   ;;  %s316_s1 = inlined_call_operand.hbm [shape: bf16[32,96], index: 1, kind: input, shape index: {}]   ;;  %s317_s2 = inlined_call_operand.vmem [shape: f32[1,96], index: 2, kind: input, shape index: {}]   ;;  %s318_s3 = inlined_call_operand.hbm [shape: bf16[8,96], index: 3, kind: output, shape index: {}]  }
   0x1   :  { %9 = vsyncpa [#allocation7], 0 }
   0x2   :  { %10 = vsyncpa [#allocation5], 0  ;;  %s240_s12 = smov [#allocation3]   ;;  %s241_s14 = smov [#allocation6]  }
   0x3   :  { %s17_s13 = sshll.u32 %s240_s12, 4  ;;  %s26_s15 = sshll.u32 %s241_s14, 4  ;;  %s18_s13 = int_to_ptr.vmem [resolvable:$true] %s17_s13  ;;  %s267_s15 = int_to_ptr.vmem [resolvable:$true] %s26_s15 }
   0x4   :  { %s168_s18 = scalar_lea.hbm %s315_s0, 64 }
   0x5   :  { %p169_p0 = scmp.ne.s32.totalorder %s315_s0, %s168_s18  ;;  %p172_p1 = scmp.lt.u32.totalorder %s168_s18, %s315_s0 }
   0x7   :  { %p174_p2 = pnand %p172_p1, %p169_p0 }
   0x9   :  { %177 = shalt.err (!%p174_p2)
}
   0xa   :  { %s178_s23 = scalar_lea.vmem %s18_s13, 64  ;;  %p183_p4 = scmp.lt.s32.totalorder %s18_s13, %s18_s13 }
   0xb   :  { %p179_p3 = scmp.ne.s32.totalorder %s18_s13, %s178_s23  ;;  %p184_p5 = scmp.lt.s32.totalorder %s178_s23, %s178_s23 }
   0xd   :  { %p185_p6 = por %p184_p5, %p183_p4 }
   0xf   :  { %p186_p7 = pnand %p185_p6, %p179_p3 }
  0x11   :  { %189 = shalt.err (!%p186_p7)
}
  0x12   :  { %20 = dma.hbm_to_vmem [thread:$0]  %s315_s0, 64, %s18_s13, [#allocation4]  }
  0x13   :  { %s190_s28 = scalar_lea.hbm %s316_s1, 256 }
  0x14   :  { %p191_p8 = scmp.ne.s32.totalorder %s316_s1, %s190_s28  ;;  %p194_p9 = scmp.lt.u32.totalorder %s190_s28, %s316_s1 }
  0x16   :  { %p196_p10 = pnand %p194_p9, %p191_p8 }
  0x18   :  { %199 = shalt.err (!%p196_p10)
}
  0x19   :  { %s200_s6 = scalar_lea.vmem %s267_s15, 256  ;;  %p205_p12 = scmp.lt.s32.totalorder %s267_s15, %s267_s15 }
  0x1a   :  { %p201_p11 = scmp.ne.s32.totalorder %s267_s15, %s200_s6  ;;  %p206_p13 = scmp.lt.s32.totalorder %s200_s6, %s200_s6 }
  0x1c   :  { %p207_p0 = por %p206_p13, %p205_p12 }
  0x1e   :  { %p208_p1 = pnand %p207_p0, %p201_p11 }
  0x20   :  { %211 = shalt.err (!%p208_p1)
}
  0x21   :  { %s242_s0 = smov 64   ;;  %s243_s7 = smov 4  }
  0x22   :  { %32 = dma.hbm_to_vmem [thread:$0]  %s316_s1, 256, %s267_s15, [#allocation7], %s242_s0, %s242_s0, %s243_s7  }
  0x23   :  { %234 = dma.done.wait [#allocation4], 64  }
  0x24   :  { %235 = vsyncadd [#allocation4], 4294967232 }
  0x25   :  { %236 = dma.done.wait [#allocation7], 256  }
  0x26   :  { %237 = vsyncadd [#allocation7], 4294967040  ;;  %vm46_vm0 = vcmask 785408   ;;  %v244_v0 = vmov 0.0   ;;  %vm245_vm1 = vmmov 0   ;;  %v166_v1 = vld [vmem:[#allocation6] sm:$0xff]  }
  0x27   :  { %47 = vst.msk [vmem:[#allocation2] sm:$0xff] %vm46_vm0, %v244_v0  ;;  %151 = vmatprep.subr.bf16.mxu0 %v244_v0  ;;  %155 = vmatprep.mubr.msk.bf16.mxu0 %vm245_vm1, %v244_v0  ;;  %v167_v2 = vld [vmem:[#allocation6 + $0x8] sm:$0xff]   ;;  %v49_v3 = vld [vmem:[#allocation3] sm:$0xf]  ;;  %vm66_vm2 = vcmask 261120   ;;  %s246_s11 = smov [#allocation8]  }
  0x28   :  { %152 = vmatpush3.bf16.msra.mxu0 %v166_v1  ;;  %v147_v10 = vld [vmem:[%s317_s2] ss:$0 sm:$0xff]  ;;  %s134_s12 = sshll.u32 %s246_s11, 4  ;;  %vm126_vm3 = vcmask 781312   ;;  %s135_s12 = int_to_ptr.vmem [resolvable:$true] %s134_s12 }
  0x29   :  { %153 = vmatprep.subr.bf16.mxu0 %v244_v0  ;;  %s212_s13 = scalar_lea.vmem %s135_s12, 64  ;;  %p217_p3 = scmp.lt.s32.totalorder %s135_s12, %s135_s12 }
  0x2a   :  { %p213_p2 = scmp.ne.s32.totalorder %s135_s12, %s212_s13  ;;  %p218_p4 = scmp.lt.s32.totalorder %s212_s13, %s212_s13 }
  0x2c   :  { %154 = vmatpush3.bf16.msra.mxu0 %v167_v2  ;;  %p219_p5 = por %p218_p4, %p217_p3 }
  0x2e   :  { %v48_v4 = vld [vmem:[#allocation2] sm:$0xff]  ;;  %p220_p6 = pnand %p219_p5, %p213_p2 }
  0x2f   :  { %156 = vmatmul.mubr.msk.bf16.vlgmr.msra.gmra.mrb[0].mxu0 %vm66_vm2, %v49_v3 }
 0x102   :  { %v104_v5 = vpop.f32.mrb[0].mxu0 }
 0x103   :  { %v110_v6 = vadd.f32 %v104_v5, %v48_v4  ;;  %v157_v7 = vpop.f32.mrb[1].mxu0 }
 0x104   :  { %v107_v8 = vpop.f32.mrb[2].mxu0 }
 0x105   :  { %112 = vst.msk [vmem:[#allocation2] sm:$0xff] %vm46_vm0, %v110_v6  ;;  %v158_v9 = vpop.f32.mrb[3].mxu0 }
 0x10c   :  { %v116_v11 = vld [vmem:[#allocation2] sm:$0xff] }
 0x10d   :  { %v124_v12 = vadd.f32 %v147_v10, %v116_v11 }
 0x10f   :  { %v125_v13 = vpack.c.bf16 %v124_v12, %v124_v12 }
 0x111   :  { %127 = vst.msk [vmem:[#allocation8] sm:$0xf] %vm126_vm3, %v125_v13 }
 0x112   :  { %223 = shalt.err (!%p220_p6)
}
 0x113   :  { %s224_s16 = scalar_lea.hbm %s318_s3, 64 }
 0x114   :  { %p225_p7 = scmp.ne.s32.totalorder %s318_s3, %s224_s16  ;;  %p228_p8 = scmp.lt.u32.totalorder %s224_s16, %s318_s3 }
 0x116   :  { %p230_p9 = pnand %p228_p8, %p225_p7 }
 0x118   :  { %233 = shalt.err (!%p230_p9)
}
 0x119   :  { %137 = dma.vmem_to_hbm [thread:$0]  %s135_s12, 64, %s318_s3, [#allocation5]  }
 0x11a   :  { %238 = dma.done.wait [#allocation5], 64  }
 0x11b   :  { %239 = vsyncadd [#allocation5], 4294967232 }
 0x11c   :  { %141 = vsyncpa [#allocation4], 1 }
 0x11d   :  { %142 = vsyncpa [#allocation7], 1 }
 0x11e   :  { %143 = vsyncpa [#allocation5], 1 }

</bundles_post_ra>
